<compile_context>
chip_gen: v7x
topology: tpu7x:2x2x1
jax: 0.10.0
libtpu: 0.0.40
codegen_flags: <defaults>
</compile_context>

<pallas_src>
import functools
import math

import jax
import jax.numpy as jnp
import numpy as np
from jax.experimental import pallas as pl
from jax.experimental.pallas import tpu as pltpu

_VMEM_BUDGET = 24 << 20  # stays well inside the 32 MiB scoped default (v7x phys = 64 MiB)


def _round_up(x, m):
    return ((x + m - 1) // m) * m


def _cdiv(a, b):
    return (a + b - 1) // b


def _sublane(itemsize):
    return max(8, 32 // itemsize)


def _tile_bytes(rows, cols, itemsize):
    """VMEM footprint of one (rows, cols) tile after (sublane, 128) alignment."""
    return _round_up(rows, _sublane(itemsize)) * _round_up(cols, 128) * itemsize


# ------------------------------- kernels ------------------------------------ #

def _l3_kernel_cl(x_ref, w_ref, b_ref, o_ref, *, compute_dtype):
    """Channels-last path: o(Lout_p, TC) = w(Lout_p, L) @ x(L, TC) + bias."""
    x = x_ref[...].astype(compute_dtype)              # cast in VMEM: HBM read stays narrow
    acc = jax.lax.dot_general(
        w_ref[...], x,
        dimension_numbers=(((1,), (0,)), ((), ())),    # contract L; no operand transpose
        preferred_element_type=jnp.float32,            # f32 MXU accumulation
    )
    o_ref[...] = (acc + b_ref[...]).astype(o_ref.dtype)   # f32 epilogue (v5e-friendly)


def _l3_kernel_rows(x_ref, w_ref, b_ref, o_ref, *, compute_dtype):
    """Row-major path: o(TM, Np) = x(TM, L) @ w(L, Np) + bias."""
    x = x_ref[...].astype(compute_dtype)
    acc = jax.lax.dot_general(
        x, w_ref[...],
        dimension_numbers=(((1,), (0,)), ((), ())),
        preferred_element_type=jnp.float32,
    )
    o_ref[...] = (acc + b_ref[...]).astype(o_ref.dtype)


# ------------------------------ apply paths ---------------------------------- #

def _apply_channels_last(x, w_cl, bias_col, *, out_len, compute_dtype, tc_target=512):
    """Contract L on the native (B, L, C) layout.  Output (B, Lout_p, C), Lout_p = ceil8(Lout)."""
    B, L, C = x.shape
    Lout_p, Lw = w_cl.shape
    assert Lw == L and Lout_p % 8 == 0 and out_len <= Lout_p
    out_dtype = x.dtype
    x_elt, c_elt, o_elt = x.dtype.itemsize, w_cl.dtype.itemsize, out_dtype.itemsize

    # weight + bias are VMEM-resident (constant index map); double buffer counted honestly
    fixed = 2 * (_tile_bytes(Lout_p, L, c_elt) + _tile_bytes(Lout_p, 1, 4))
    if fixed > _VMEM_BUDGET // 2:
        raise ValueError("local-linear weight too large for a VMEM-resident strategy")

    if C <= 128:
        TC = C                                        # full-extent lane block (always legal)
    else:
        per_col = 2 * (_round_up(L, _sublane(x_elt)) * x_elt
                       + _round_up(Lout_p, _sublane(o_elt)) * o_elt)
        cap = max(128, ((_VMEM_BUDGET - fixed) // per_col) // 128 * 128)
        TC = int(min(tc_target, cap, max(128, (C // 128) * 128)))
    grid = (B, _cdiv(C, TC))                          # ragged last C tile handled by Pallas

    need = fixed + 2 * (_tile_bytes(L, TC, x_elt) + _tile_bytes(Lout_p, TC, o_elt))
    vmem_limit = int(min(max(need + (2 << 20), 8 << 20), 30 << 20))

    cost = pl.CostEstimate(
        flops=2 * B * C * L * out_len,
        transcendentals=0,
        bytes_accessed=B * L * C * x_elt + Lout_p * L * c_elt + B * Lout_p * C * o_elt,
    )

    out = pl.pallas_call(
        functools.partial(_l3_kernel_cl, compute_dtype=compute_dtype),
        out_shape=jax.ShapeDtypeStruct((B, Lout_p, C), out_dtype),
        grid=grid,
        in_specs=[
            pl.BlockSpec((None, L, TC), lambda b, c: (b, 0, c)),    # x tile, B squeezed
            pl.BlockSpec((Lout_p, L), lambda b, c: (0, 0)),         # weight: VMEM-resident
            pl.BlockSpec((Lout_p, 1), lambda b, c: (0, 0)),         # bias:   VMEM-resident
        ],
        out_specs=pl.BlockSpec((None, Lout_p, TC), lambda b, c: (b, 0, c)),
        compiler_params=pltpu.CompilerParams(
            dimension_semantics=("parallel", "parallel"),
            vmem_limit_bytes=vmem_limit,
        ),
        cost_estimate=cost,
    )(x, w_cl, bias_col)
    return out if out_len == Lout_p else out[:, :out_len, :]


def _apply_rows(x, w_rows, bias_row, *, out_len, compute_dtype, tm_target=1024):
    """Small-C path: (B*C, L) @ (L, Np), lane-dense output, no input padding at all."""
    B, L, C = x.shape
    Lw, Np = w_rows.shape
    assert Lw == L and Np % 128 == 0 and out_len <= Np
    out_dtype = x.dtype
    x_elt, c_elt, o_elt = x.dtype.itemsize, w_rows.dtype.itemsize, out_dtype.itemsize

    M = B * C
    x2d = jnp.transpose(x, (0, 2, 1)).reshape(M, L)   # only layout pass on this path

    fixed = 2 * (_tile_bytes(L, Np, c_elt) + _tile_bytes(1, Np, 4))
    if fixed > _VMEM_BUDGET // 2:
        raise ValueError("local-linear weight too large for a VMEM-resident strategy")
    per_row = 2 * (_round_up(L, 128) * x_elt + Np * o_elt)
    cap = max(8, ((_VMEM_BUDGET - fixed) // per_row) // 8 * 8)

    if M <= min(tm_target, cap):
        TM = M                                        # single full-extent tile (legal for any M)
    else:
        TM = min(tm_target, cap)
        if _cdiv(M, TM) < 4:                          # keep both v7x TCs fed + 2-deep pipeline
            TM = min(TM, max(8, _round_up(_cdiv(M, 4), 8)))
    grid = (_cdiv(M, TM),)                            # ragged last M tile handled by Pallas

    need = fixed + 2 * (_tile_bytes(TM, L, x_elt) + _tile_bytes(TM, Np, o_elt))
    vmem_limit = int(min(max(need + (2 << 20), 8 << 20), 30 << 20))

    cost = pl.CostEstimate(
        flops=2 * M * L * out_len,
        transcendentals=0,
        bytes_accessed=M * L * x_elt + L * Np * c_elt + M * Np * o_elt,
    )

    out2d = pl.pallas_call(
        functools.partial(_l3_kernel_rows, compute_dtype=compute_dtype),
        out_shape=jax.ShapeDtypeStruct((M, Np), out_dtype),
        grid=grid,
        in_specs=[
            pl.BlockSpec((TM, L), lambda i: (i, 0)),              # x tile, pipelined over M
            pl.BlockSpec((L, Np), lambda i: (0, 0)),              # weight: VMEM-resident
            pl.BlockSpec((1, Np), lambda i: (0, 0)),              # bias:   VMEM-resident
        ],
        out_specs=pl.BlockSpec((TM, Np), lambda i: (i, 0)),
        compiler_params=pltpu.CompilerParams(
            dimension_semantics=("parallel",),
            vmem_limit_bytes=vmem_limit,
        ),
        cost_estimate=cost,
    )(x2d, w_rows, bias_row)
    out = out2d[:, :out_len].reshape(B, C, out_len)
    return jnp.transpose(out, (0, 2, 1))


# ------------------------- parameter construction --------------------------- #

def make_local_linear_params(key, input_size, window_size=3, stride=1, padding=None,
                             auto_padding=True, mod=0, use_pooling_init=0,
                             compute_dtype=jnp.float32):
    """Mirror LocalLinearLayer.__init__ and pre-bake both kernel-side operators."""
    assert 1 <= stride <= window_size
    if padding is None:
        padding = (window_size - 1) // 2 if (auto_padding and stride == 1) else 0
    assert padding >= 0
    if mod == 0:
        padded_length = input_size + 2 * padding
        output_length = input_size
    else:
        padded_length = input_size + padding
        output_length = (padded_length - window_size) // stride + 1

    mask_np = np.zeros((output_length, padded_length), dtype=np.float32)
    for i in range(output_length):
        mask_np[i, i * stride: i * stride + window_size] = 1.0
    mask = jnp.asarray(mask_np)

    kw, kb = jax.random.split(key)
    bound = 1.0 / math.sqrt(padded_length)             # nn.Linear default uniform bound
    weight = jax.random.uniform(kw, (output_length, padded_length),
                                jnp.float32, -bound, bound)
    if use_pooling_init:
        weight = jnp.where(mask > 0, 1.0 / window_size, 0.0)
    else:
        weight = weight * mask                          # _init_weights: zero outside window
    bias = jax.random.uniform(kb, (output_length,), jnp.float32, -bound, bound)

    # Fold the forward-time mask AND the input padding into a (Lout, L) operator.
    # The module pads by concatenating the first/last `padding`-element SEGMENTS
    # of the series (torch.cat of x[..., :p] / x[..., -p:]), so every padded
    # column is a copy of an original column; scatter-adding the weight columns
    # onto those originals is exact.  (This is the single place masking happens.)
    w_masked = weight * mask
    if padding > 0:
        if mod == 0:
            col_idx = np.concatenate([np.arange(padding),
                                      np.arange(input_size),
                                      np.arange(input_size - padding, input_size)])
        else:
            col_idx = np.concatenate([np.arange(input_size),
                                      np.arange(input_size - padding, input_size)])
    else:
        col_idx = np.arange(input_size)
    col_idx = jnp.asarray(col_idx, dtype=jnp.int32)
    w_folded = jnp.zeros((output_length, input_size), jnp.float32).at[:, col_idx].add(w_masked)

    # Channels-last operands: Lout on sublanes (pad to 8 only), contraction L unpadded.
    lout_p = _round_up(output_length, 8)
    w_cl = jnp.zeros((lout_p, input_size), jnp.float32).at[:output_length, :].set(w_folded)
    bias_col = jnp.zeros((lout_p, 1), jnp.float32).at[:output_length, 0].set(bias)

    # Row-major operands: pre-transposed (L, Np), output lanes padded to 128.
    np_ = _round_up(output_length, 128)
    w_rows = jnp.zeros((input_size, np_), jnp.float32).at[:, :output_length].set(w_folded.T)
    bias_row = jnp.zeros((1, np_), jnp.float32).at[0, :output_length].set(bias)

    return dict(weight=weight, mask=mask, bias=bias, padding=padding, mod=mod,
                input_size=input_size, output_length=output_length,
                w_cl=w_cl.astype(compute_dtype), bias_col=bias_col,
                w_rows=w_rows.astype(compute_dtype), bias_row=bias_row,
                compute_dtype=compute_dtype)


# ------------------------------ forward pass -------------------------------- #

def local_linear_forward(x, params):
    """x: (B, L, C) -> (B, output_length, C), exactly LocalLinearLayer.forward."""
    B, L, C = x.shape
    assert L == params["input_size"]
    if C >= 128:
        # Native-layout path: contract L directly; no wrapper transposes/reshape.
        return _apply_channels_last(x, params["w_cl"], params["bias_col"],
                                    out_len=params["output_length"],
                                    compute_dtype=params["compute_dtype"])
    # Small-C path: lane-dense (B*C, L) @ (L, Np); no input padding, big row tiles.
    return _apply_rows(x, params["w_rows"], params["bias_row"],
                       out_len=params["output_length"],
                       compute_dtype=params["compute_dtype"])


def local_linear_reference(x, params):
    """Pure-JAX mirror of the PyTorch math (explicit segment padding + masked linear)."""
    xc = jnp.transpose(x, (0, 2, 1))
    padding, mod = params["padding"], params["mod"]
    if padding > 0:
        if mod == 0:
            xc = jnp.concatenate([xc[:, :, :padding], xc, xc[:, :, -padding:]], axis=-1)
        else:
            xc = jnp.concatenate([xc, xc[:, :, -padding:]], axis=-1)
    w = params["weight"] * params["mask"]
    out = jnp.einsum("bcp,lp->bcl", xc, w) + params["bias"][None, None, :]
    return jnp.transpose(out, (0, 2, 1))


# ---------------------------------- main ------------------------------------ #

if __name__ == "__main__":
    key = jax.random.PRNGKey(0)
    kx_small, kx_big, k0, k1 = jax.random.split(key, 4)

    # Exercise both paths: small-C (row-major) and channel-heavy (native layout),
    # each with mod=0 (same-length output) and mod=1 (valid-like output).
    for (B, L, C, kx) in ((2, 16, 4, kx_small), (2, 16, 128, kx_big)):
        x = jax.random.normal(kx, (B, L, C), dtype=jnp.float32)
        for mod, ws, kp in ((0, 5, k0), (1, 4, k1)):
            params = make_local_linear_params(kp, input_size=L, window_size=ws,
                                              stride=1, mod=mod, use_pooling_init=0)
            out = jax.block_until_ready(local_linear_forward(x, params))
            ref = local_linear_reference(x, params)
            assert out.shape == (B, params["output_length"], C), out.shape
            np.testing.assert_allclose(np.asarray(out), np.asarray(ref),
                                       rtol=1e-5, atol=1e-5)

    # bf16-MXU production path (v6e/v7x recommendation): weight stored bf16, x cast
    # in-kernel, f32 accumulation + f32 bias epilogue; bf16-appropriate tolerance.
    B, L, C = 2, 16, 128
    x = jax.random.normal(kx_big, (B, L, C), dtype=jnp.float32)
    params_bf16 = make_local_linear_params(k0, input_size=L, window_size=5, stride=1,
                                           mod=0, compute_dtype=jnp.bfloat16)
    out_bf16 = jax.block_until_ready(local_linear_forward(x, params_bf16))
    ref_bf16 = local_linear_reference(x, params_bf16)
    np.testing.assert_allclose(np.asarray(out_bf16), np.asarray(ref_bf16),
                               rtol=2e-2, atol=2e-2)

    # TODO(synk): the weight-gradient mask hook is training-time only (backward pass)
    # and has no forward-pass effect, so it is intentionally not modeled here.
    print("KERNEL_OK")
</pallas_src>

<mosaic_0001>
module attributes {stable_mosaic.version = 11 : i64} {
  func.func @_l3_kernel_rows(%arg0: i32, %arg1: memref<8x16xf32, #tpu.memory_space<vmem>>, %arg2: memref<16x128xf32, #tpu.memory_space<vmem>>, %arg3: memref<1x128xf32, #tpu.memory_space<vmem>>, %arg4: memref<8x128xf32, #tpu.memory_space<vmem>>) attributes {dimension_semantics = [#tpu.dimension_semantics<parallel>], iteration_bounds = array<i64: 1>, scalar_prefetch = 0 : i64, scratch_operands = 0 : i64, tpu.core_type = #tpu.core_type<tc>, window_params = [{transform_indices = @transform_0, window_bounds = array<i64: 8, 16>}, {pipeline_mode = #tpu.pipeline_mode<synchronous>, transform_indices = @transform_1, window_bounds = array<i64: 16, 128>}, {pipeline_mode = #tpu.pipeline_mode<synchronous>, transform_indices = @transform_2, window_bounds = array<i64: 1, 128>}, {transform_indices = @transform_3, window_bounds = array<i64: 8, 128>}]} {
    %c0 = arith.constant 0 : index
    %c0_0 = arith.constant 0 : index
    %0 = vector.load %arg1[%c0, %c0_0] : memref<8x16xf32, #tpu.memory_space<vmem>>, vector<8x16xf32>
    %c0_1 = arith.constant 0 : index
    %c0_2 = arith.constant 0 : index
    %1 = vector.load %arg2[%c0_1, %c0_2] : memref<16x128xf32, #tpu.memory_space<vmem>>, vector<16x128xf32>
    %cst = arith.constant dense<0.000000e+00> : vector<8x128xf32>
    %2 = tpu.matmul %0, %1, %cst {dimension_numbers = #tpu.dot_dimension_numbers<[1], [0], [0], [1], [0, 0, 1, 1], [], []>} : vector<8x16xf32>, vector<16x128xf32>, vector<8x128xf32> -> vector<8x128xf32>
    %c0_3 = arith.constant 0 : index
    %c0_4 = arith.constant 0 : index
    %3 = vector.load %arg3[%c0_3, %c0_4] : memref<1x128xf32, #tpu.memory_space<vmem>>, vector<1x128xf32>
    %4 = vector.broadcast %3 : vector<1x128xf32> to vector<8x128xf32>
    %5 = arith.addf %2, %4 : vector<8x128xf32>
    %c0_5 = arith.constant 0 : index
    %c0_6 = arith.constant 0 : index
    %6 = vector.load %arg4[%c0_5, %c0_6] : memref<8x128xf32, #tpu.memory_space<vmem>>, vector<8x128xf32>
    tpu.vector_store %arg4[%c0_5, %c0_6], %5 {strides = array<i32>} : memref<8x128xf32, #tpu.memory_space<vmem>>, vector<8x128xf32>,
    return
  }
  func.func @transform_0(%arg0: i32) -> (i32, i32) {
    %c0_i32 = arith.constant 0 : i32
    %c0_i32_0 = arith.constant 0 : i32
    return %arg0, %c0_i32 : i32, i32
  }
  func.func @transform_1(%arg0: i32) -> (i32, i32) {
    %c0_i32 = arith.constant 0 : i32
    %c0_i32_0 = arith.constant 0 : i32
    %c0_i32_1 = arith.constant 0 : i32
    return %c0_i32, %c0_i32_0 : i32, i32
  }
  func.func @transform_2(%arg0: i32) -> (i32, i32) {
    %c0_i32 = arith.constant 0 : i32
    %c0_i32_0 = arith.constant 0 : i32
    %c0_i32_1 = arith.constant 0 : i32
    return %c0_i32, %c0_i32_0 : i32, i32
  }
  func.func @transform_3(%arg0: i32) -> (i32, i32) {
    %c0_i32 = arith.constant 0 : i32
    %c0_i32_0 = arith.constant 0 : i32
    return %arg0, %c0_i32 : i32, i32
  }
}

</mosaic_0001>

<bundles_post_ra>
// kernel: tpu_custom_call.1
= control target key start
LH: loop header
LB: loop body
LE: loop exit
PB: predicated region body
PF: predicated region fallthrough
CT: control target
= control target key end

     0   :  { %8 = vsyncpa [#allocation3], 0  ;;  %s311_s0 = inlined_call_operand.hbm [shape: f32[8,16], index: 0, kind: input, shape index: {}]   ;;  %s312_s1 = inlined_call_operand.hbm [shape: f32[16,128], index: 1, kind: input, shape index: {}]   ;;  %s313_s2 = inlined_call_operand.vmem [shape: f32[1,128], index: 2, kind: input, shape index: {}]   ;;  %s314_s3 = inlined_call_operand.hbm [shape: f32[8,128], index: 3, kind: output, shape index: {}]  }
   0x1   :  { %9 = vsyncpa [#allocation6], 0 }
   0x2   :  { %10 = vsyncpa [#allocation4], 0  ;;  %s237_s12 = smov [#allocation2]   ;;  %s238_s14 = smov [#allocation5]  }
   0x3   :  { %s17_s13 = sshll.u32 %s237_s12, 4  ;;  %s26_s15 = sshll.u32 %s238_s14, 4  ;;  %s18_s13 = int_to_ptr.vmem [resolvable:$true] %s17_s13  ;;  %s265_s15 = int_to_ptr.vmem [resolvable:$true] %s26_s15 }
   0x4   :  { %s165_s18 = scalar_lea.hbm %s311_s0, 128 }
   0x5   :  { %p166_p0 = scmp.ne.s32.totalorder %s311_s0, %s165_s18  ;;  %p169_p1 = scmp.lt.u32.totalorder %s165_s18, %s311_s0 }
   0x7   :  { %p171_p2 = pnand %p169_p1, %p166_p0 }
   0x9   :  { %174 = shalt.err (!%p171_p2)
}
   0xa   :  { %s175_s23 = scalar_lea.vmem %s18_s13, 128  ;;  %p180_p4 = scmp.lt.s32.totalorder %s18_s13, %s18_s13 }
   0xb   :  { %p176_p3 = scmp.ne.s32.totalorder %s18_s13, %s175_s23  ;;  %p181_p5 = scmp.lt.s32.totalorder %s175_s23, %s175_s23 }
   0xd   :  { %p182_p6 = por %p181_p5, %p180_p4 }
   0xf   :  { %p183_p7 = pnand %p182_p6, %p176_p3 }
  0x11   :  { %186 = shalt.err (!%p183_p7)
}
  0x12   :  { %20 = dma.hbm_to_vmem [thread:$0]  %s311_s0, 128, %s18_s13, [#allocation3]  }
  0x13   :  { %s187_s28 = scalar_lea.hbm %s312_s1, 256 }
  0x14   :  { %p188_p8 = scmp.ne.s32.totalorder %s312_s1, %s187_s28  ;;  %p191_p9 = scmp.lt.u32.totalorder %s187_s28, %s312_s1 }
  0x16   :  { %p193_p10 = pnand %p191_p9, %p188_p8 }
  0x18   :  { %196 = shalt.err (!%p193_p10)
}
  0x19   :  { %s197_s6 = scalar_lea.vmem %s265_s15, 256  ;;  %p202_p12 = scmp.lt.s32.totalorder %s265_s15, %s265_s15 }
  0x1a   :  { %p198_p11 = scmp.ne.s32.totalorder %s265_s15, %s197_s6  ;;  %p203_p13 = scmp.lt.s32.totalorder %s197_s6, %s197_s6 }
  0x1c   :  { %p204_p0 = por %p203_p13, %p202_p12 }
  0x1e   :  { %p205_p1 = pnand %p204_p0, %p198_p11 }
  0x20   :  { %208 = shalt.err (!%p205_p1)
}
  0x21   :  { %s239_s0 = smov 128   ;;  %s240_s7 = smov 8  }
  0x22   :  { %32 = dma.hbm_to_vmem [thread:$0]  %s312_s1, 256, %s265_s15, [#allocation6], %s239_s0, %s239_s0, %s240_s7  }
  0x23   :  { %231 = dma.done.wait [#allocation3], 128  }
  0x24   :  { %232 = vsyncadd [#allocation3], 4294967168 }
  0x25   :  { %233 = dma.done.wait [#allocation6], 256  }
  0x26   :  { %234 = vsyncadd [#allocation6], 4294967040  ;;  %v241_v0 = vmov 0.0|0.0   ;;  %vm242_vm0 = vmmov 0   ;;  %v243_v1 = vmov 0.0   ;;  %v42_v2 = vld [vmem:[#allocation5] sm:$0xff] }
  0x27   :  { %154 = vmatprep.subr.bf16.mxu0 %v241_v0  ;;  %151 = vmatprep.mubr.msk.f32.mxu0 %vm242_vm0, %v243_v1  ;;  %v43_v3 = vld [vmem:[#allocation5 + $0x8] sm:$0xff]  ;;  %v41_v5 = vld [vmem:[#allocation2] sm:$0xff]  ;;  %vm51_vm1 = vcmask 130048   ;;  %s244_s1 = smov [#allocation7]  }
  0x28   :  { %v155_v4 = vpack.c.bf16 %v43_v3, %v42_v2  ;;  %v142_v6 = vld [vmem:[%s313_s2] ss:$0 sm:$0xff]  ;;  %s132_s12 = sshll.u32 %s244_s1, 4  ;;  %s133_s12 = int_to_ptr.vmem [resolvable:$true] %s132_s12 }
  0x29   :  { %s209_s13 = scalar_lea.vmem %s133_s12, 128  ;;  %p214_p3 = scmp.lt.s32.totalorder %s133_s12, %s133_s12 }
  0x2a   :  { %156 = vmatpush3.bf16.msra.mxu0 %v155_v4  ;;  %p210_p2 = scmp.ne.s32.totalorder %s133_s12, %s209_s13  ;;  %p215_p4 = scmp.lt.s32.totalorder %s209_s13, %s209_s13 }
  0x2c   :  { %p216_p5 = por %p215_p4, %p214_p3 }
  0x2d   :  { %152 = vmatmul.mubr.msk.f32.vlgmr.msra.gmra.mrb[0].mxu0 %vm51_vm1, %v41_v5 }
  0x2e   :  { %p217_p6 = pnand %p216_p5, %p210_p2 }
 0x100   :  { %v121_v7 = vpop.f32.mrb[0].mxu0 }
 0x101   :  { %v122_v8 = vadd.f32 %v142_v6, %v121_v7  ;;  %v153_v9 = vpop.f32.mrb[1].mxu0 }
 0x103   :  { %125 = vst [vmem:[#allocation7] sm:$0xff] %v122_v8 }
 0x104   :  { %220 = shalt.err (!%p217_p6)
}
 0x105   :  { %s221_s16 = scalar_lea.hbm %s314_s3, 128 }
 0x106   :  { %p222_p7 = scmp.ne.s32.totalorder %s314_s3, %s221_s16  ;;  %p225_p8 = scmp.lt.u32.totalorder %s221_s16, %s314_s3 }
 0x108   :  { %p227_p9 = pnand %p225_p8, %p222_p7 }
 0x10a   :  { %230 = shalt.err (!%p227_p9)
}
 0x10b   :  { %135 = dma.vmem_to_hbm [thread:$0]  %s133_s12, 128, %s314_s3, [#allocation4]  }
 0x10c   :  { %235 = dma.done.wait [#allocation4], 128  }
 0x10d   :  { %236 = vsyncadd [#allocation4], 4294967168 }
 0x10e   :  { %139 = vsyncpa [#allocation3], 1 }
 0x10f   :  { %140 = vsyncpa [#allocation6], 1 }
 0x110   :  { %141 = vsyncpa [#allocation4], 1 }

</bundles_post_ra>
